<compile_context>
chip_gen: v6e
topology: v6e:2x2x1
jax: 0.10.0
libtpu: 0.0.40
codegen_flags: <defaults>
</compile_context>

<pallas_src>
import functools
import math

import jax
import jax.numpy as jnp
import numpy as np
from jax.experimental import pallas as pl
from jax.experimental.pallas import tpu as pltpu


def _round_up(v, m):
    return ((v + m - 1) // m) * m


def _vmem_limit_bytes():
    """Generation-aware scoped-VMEM limit: ~5/8 of physical, capped at 64 MiB.
    (v7x: 64 MiB physical -> 40 MiB; v5e/v6e: 128 MiB physical -> 64 MiB)."""
    cap = 128 * 1024 * 1024
    try:
        info = pltpu.get_tpu_info()
        cap = int(getattr(info, "vmem_capacity_bytes", cap)) or cap
    except Exception:
        pass
    return int(min(64 * 1024 * 1024, max(16 * 1024 * 1024, (cap * 5) // 8)))


def _num_tensorcores():
    """Best-effort TensorCore-per-chip count (v7x has 2); defaults to 1."""
    try:
        info = pltpu.get_tpu_info()
        for attr in ("num_tensorcores", "tensorcores_per_chip", "num_cores"):
            v = getattr(info, attr, None)
            if v:
                return int(v)
    except Exception:
        pass
    return 1


def _choose_tile_n(n, c_block, q, itemsize, vmem_limit, max_tile_n):
    """Pick the biggest N tile (multiple of 128) whose double-buffered input
    tiles fit the scoped-VMEM budget, minus accumulator/output headroom."""
    headroom = max(2 * 1024 * 1024, 8 * q * c_block * 4)
    budget = max(vmem_limit - headroom, 2 * 1024 * 1024)
    per_col = 2 * itemsize * (c_block + q)              # 2x: double buffering
    cap = max(128, min((budget // max(per_col, 1)) // 128 * 128, 8192))
    if max_tile_n is not None:
        cap = min(cap, max(128, (max_tile_n // 128) * 128))
    if n <= cap:
        return n, 1                 # single full-dim block (exempt from 128 rule)
    num_tiles = -(-n // cap)                            # ceil
    tn = _round_up(-(-n // num_tiles), 128)             # balance, minimize waste
    return tn, -(-n // tn)


def _mask_pool_kernel(x_ref, m_ref, o_ref, acc_ref, den_ref, *,
                      hard_pooling, thr_logit, mask_threshold,
                      n_valid, tile_n, ragged):
    # x_ref : [1, Cb, tN]   m_ref : [1, Q, tN]   o_ref : [1, Q, Cb]
    # acc_ref : [Q, Cb] f32 scratch   den_ref : [Q, 1] f32 scratch
    k = pl.program_id(2)

    @pl.when(k == 0)
    def _init():
        acc_ref[...] = jnp.zeros_like(acc_ref)
        den_ref[...] = jnp.zeros_like(den_ref)

    logits = m_ref[0]                                    # [Q, tN]
    x_tile = x_ref[0]                                    # [Cb, tN]

    if hard_pooling and thr_logit is not None:
        # sigmoid is monotonic: sigmoid(m) > thr  <=>  m > logit(thr).
        # Avoids Q*N transcendentals on the single EUP slot.
        m = (logits > jnp.asarray(thr_logit, logits.dtype)).astype(x_tile.dtype)
    else:
        m = jax.nn.sigmoid(logits.astype(jnp.float32))
        if hard_pooling:
            m = (m > mask_threshold).astype(jnp.float32)
        m = m.astype(x_tile.dtype)

    if ragged:
        # Ragged last N tile: zero the mask AND x for out-of-range columns.
        # (Boundary-block contents are undefined; 0 * Inf would NaN the acc.)
        col = jax.lax.broadcasted_iota(jnp.int32, (1, tile_n), 1)
        valid = (k * tile_n + col) < n_valid             # [1, tN]
        m = jnp.where(valid, m, jnp.zeros_like(m))
        x_tile = jnp.where(valid, x_tile, jnp.zeros_like(x_tile))

    # Accumulate spatial mask sums (normalization denominators) in f32.
    den_ref[...] += jnp.sum(m.astype(jnp.float32), axis=-1, keepdims=True)

    # Unnormalized contraction over the shared last axis on the MXU:
    #   m[Q, tN] . x[Cb, tN] -> [Q, Cb], f32 accumulation.
    # TODO(synk): if the bundle shows a per-step vxpose of the large x tile,
    # flip to x-as-LHS (a [Cb, Q] accumulator) and transpose once at finalize.
    acc_ref[...] += jax.lax.dot_general(
        m, x_tile,
        dimension_numbers=(((1,), (1,)), ((), ())),
        preferred_element_type=jnp.float32,
    )

    @pl.when(k == pl.num_programs(2) - 1)
    def _finalize():
        inv = pl.reciprocal(den_ref[...] + 1e-8, approx=False)   # [Q, 1]
        o_ref[0] = (acc_ref[...] * inv).astype(o_ref.dtype)


def mask_pooling(x, mask, *, hard_pooling=True, mask_threshold=0.5,
                 c_splits=None, max_tile_n=None):
    """x: [B, C, H, W], mask: [B, Q, H, W]  ->  [B, Q, C]  (dtype of x)."""
    assert x.shape[-2:] == mask.shape[-2:]
    B, C, H, W = x.shape
    _, Q, _, _ = mask.shape
    N = H * W

    # Free reshapes only — no padding / copy passes over HBM.
    x_flat = x.reshape(B, C, N)        # [B, C, N]  channels-major, no transpose
    m_flat = mask.reshape(B, Q, N)     # [B, Q, N]

    if c_splits is None:
        # Split C across TensorCores only when a single batch would otherwise
        # leave a core idle (v7x).  x traffic stays unduplicated; only the
        # much smaller mask is read once per split.
        c_splits = 2 if (B == 1 and C % 256 == 0 and _num_tensorcores() >= 2) else 1
    if c_splits != 1 and C % (128 * c_splits) != 0:
        c_splits = 1
    c_block = C // c_splits

    vmem_limit = _vmem_limit_bytes()
    tn, num_tiles = _choose_tile_n(N, c_block, Q, x.dtype.itemsize,
                                   vmem_limit, max_tile_n)
    ragged = (num_tiles * tn != N)

    thr_logit = None
    if hard_pooling and 0.0 < mask_threshold < 1.0:
        thr_logit = math.log(mask_threshold / (1.0 - mask_threshold))

    kernel = functools.partial(
        _mask_pool_kernel,
        hard_pooling=hard_pooling,
        thr_logit=thr_logit,
        mask_threshold=mask_threshold,
        n_valid=N, tile_n=tn, ragged=ragged,
    )

    out = pl.pallas_call(
        kernel,
        out_shape=jax.ShapeDtypeStruct((B, Q, C), x.dtype),
        grid_spec=pltpu.PrefetchScalarGridSpec(
            num_scalar_prefetch=0,
            grid=(c_splits, B, num_tiles),
            in_specs=[
                pl.BlockSpec((1, c_block, tn), lambda s, b, k: (b, s, k)),
                pl.BlockSpec((1, Q, tn), lambda s, b, k: (b, 0, k)),
            ],
            out_specs=pl.BlockSpec((1, Q, c_block), lambda s, b, k: (b, 0, s)),
            scratch_shapes=[
                pltpu.VMEM((Q, c_block), jnp.float32),
                pltpu.VMEM((Q, 1), jnp.float32),
            ],
        ),
        compiler_params=pltpu.CompilerParams(
            dimension_semantics=("parallel", "parallel", "arbitrary"),
            vmem_limit_bytes=vmem_limit,
        ),
    )(x_flat, m_flat)
    return out


def _reference(x, mask, hard_pooling=True, mask_threshold=0.5):
    m = jax.nn.sigmoid(mask.astype(jnp.float32))
    if hard_pooling:
        m = (m > mask_threshold).astype(jnp.float32)
    denorm = jnp.sum(m, axis=(-1, -2), keepdims=True) + 1e-8
    return jnp.einsum(
        "bchw,bqhw->bqc", x.astype(jnp.float32), m / denorm
    ).astype(x.dtype)


if __name__ == "__main__":
    key = jax.random.PRNGKey(0)
    kx, km = jax.random.split(key)

    # ---- base case: hard + soft pooling, f32 ----
    B, C, H, W, Q = 2, 32, 16, 16, 8
    x = jax.random.normal(kx, (B, C, H, W), dtype=jnp.float32)
    mask = jax.random.normal(km, (B, Q, H, W), dtype=jnp.float32)

    out = jax.block_until_ready(mask_pooling(x, mask, hard_pooling=True))
    ref = _reference(x, mask, hard_pooling=True)
    assert out.shape == (B, Q, C)
    np.testing.assert_allclose(np.asarray(out), np.asarray(ref),
                               rtol=1e-5, atol=1e-5)

    out_soft = jax.block_until_ready(mask_pooling(x, mask, hard_pooling=False))
    ref_soft = _reference(x, mask, hard_pooling=False)
    np.testing.assert_allclose(np.asarray(out_soft), np.asarray(ref_soft),
                               rtol=1e-5, atol=1e-5)

    # ---- C-split path (B==1 megacore sharding), exercised explicitly ----
    x1 = jax.random.normal(kx, (1, 256, H, W), dtype=jnp.float32)
    m1 = jax.random.normal(km, (1, Q, H, W), dtype=jnp.float32)
    out_cs = jax.block_until_ready(
        mask_pooling(x1, m1, hard_pooling=True, c_splits=2))
    ref_cs = _reference(x1, m1, hard_pooling=True)
    np.testing.assert_allclose(np.asarray(out_cs), np.asarray(ref_cs),
                               rtol=1e-5, atol=1e-5)

    # ---- ragged-last-tile path (N not a multiple of the forced tile) ----
    xr = jax.random.normal(kx, (B, C, 20, 20), dtype=jnp.float32)   # N = 400
    mr = jax.random.normal(km, (B, Q, 20, 20), dtype=jnp.float32)
    out_rg = jax.block_until_ready(
        mask_pooling(xr, mr, hard_pooling=True, max_tile_n=256))
    ref_rg = _reference(xr, mr, hard_pooling=True)
    np.testing.assert_allclose(np.asarray(out_rg), np.asarray(ref_rg),
                               rtol=1e-5, atol=1e-5)

    # ---- bf16 inputs accepted directly (no upcast pass) ----
    xb = x.astype(jnp.bfloat16)
    mb = mask.astype(jnp.bfloat16)
    out_bf = jax.block_until_ready(mask_pooling(xb, mb, hard_pooling=True))
    ref_bf = _reference(xb, mb, hard_pooling=True)
    np.testing.assert_allclose(np.asarray(out_bf, dtype=np.float32),
                               np.asarray(ref_bf, dtype=np.float32),
                               rtol=3e-2, atol=3e-2)

    print("KERNEL_OK")
</pallas_src>

<mosaic_0001>
module attributes {stable_mosaic.version = 11 : i64} {
  func.func @_mask_pool_kernel(%arg0: i32, %arg1: i32, %arg2: i32, %arg3: memref<1x32x256xf32, #tpu.memory_space<vmem>>, %arg4: memref<1x8x256xf32, #tpu.memory_space<vmem>>, %arg5: memref<1x8x32xf32, #tpu.memory_space<vmem>>, %arg6: memref<8x32xf32, #tpu.memory_space<vmem>>, %arg7: memref<8x1xf32, #tpu.memory_space<vmem>>) attributes {dimension_semantics = [#tpu.dimension_semantics<parallel>, #tpu.dimension_semantics<parallel>, #tpu.dimension_semantics<arbitrary>], iteration_bounds = array<i64: 1, 2, 1>, scalar_prefetch = 0 : i64, scratch_operands = 2 : i64, tpu.core_type = #tpu.core_type<tc>, window_params = [{transform_indices = @transform_0, window_bounds = array<i64: 1, 32, 256>}, {transform_indices = @transform_1, window_bounds = array<i64: 1, 8, 256>}, {transform_indices = @transform_2, window_bounds = array<i64: 1, 8, 32>}]} {
    %c0_i32 = arith.constant 0 : i32
    %0 = arith.cmpi eq, %arg2, %c0_i32 : i32
    %1 = arith.extui %0 : i1 to i32
    %c0_i32_0 = arith.constant 0 : i32
    %2 = arith.cmpi ne, %1, %c0_i32_0 : i32
    scf.if %2 {
      %cst_18 = arith.constant 0.000000e+00 : f32
      %23 = vector.broadcast %cst_18 : f32 to vector<8x32xf32>
      %c0_19 = arith.constant 0 : index
      %c0_20 = arith.constant 0 : index
      %24 = vector.load %arg6[%c0_19, %c0_20] : memref<8x32xf32, #tpu.memory_space<vmem>>, vector<8x32xf32>
      tpu.vector_store %arg6[%c0_19, %c0_20], %23 {strides = array<i32>} : memref<8x32xf32, #tpu.memory_space<vmem>>, vector<8x32xf32>,
      %cst_21 = arith.constant 0.000000e+00 : f32
      %25 = vector.broadcast %cst_21 : f32 to vector<8x1xf32>
      %c0_22 = arith.constant 0 : index
      %c0_23 = arith.constant 0 : index
      %26 = vector.load %arg7[%c0_22, %c0_23] : memref<8x1xf32, #tpu.memory_space<vmem>>, vector<8x1xf32>
      tpu.vector_store %arg7[%c0_22, %c0_23], %25 {strides = array<i32>} : memref<8x1xf32, #tpu.memory_space<vmem>>, vector<8x1xf32>,
    } else {
    }
    %c0 = arith.constant 0 : index
    %c0_1 = arith.constant 0 : index
    %c0_2 = arith.constant 0 : index
    %3 = vector.load %arg4[%c0, %c0_1, %c0_2] : memref<1x8x256xf32, #tpu.memory_space<vmem>>, vector<1x8x256xf32>
    %4 = vector.shape_cast %3 : vector<1x8x256xf32> to vector<8x256xf32>
    %c0_3 = arith.constant 0 : index
    %c0_4 = arith.constant 0 : index
    %c0_5 = arith.constant 0 : index
    %5 = vector.load %arg3[%c0_3, %c0_4, %c0_5] : memref<1x32x256xf32, #tpu.memory_space<vmem>>, vector<1x32x256xf32>
    %6 = vector.shape_cast %5 : vector<1x32x256xf32> to vector<32x256xf32>
    %cst = arith.constant 0.000000e+00 : f32
    %7 = vector.broadcast %cst : f32 to vector<8x256xf32>
    %8 = arith.cmpf ogt, %4, %7 : vector<8x256xf32>
    %9 = arith.extui %8 : vector<8x256xi1> to vector<8x256xi32>
    %10 = arith.sitofp %9 : vector<8x256xi32> to vector<8x256xf32>
    %c0_6 = arith.constant 0 : index
    %c0_7 = arith.constant 0 : index
    %11 = vector.load %arg7[%c0_6, %c0_7] : memref<8x1xf32, #tpu.memory_space<vmem>>, vector<8x1xf32>
    %cst_8 = arith.constant dense<0.000000e+00> : vector<8xf32>
    %12 = vector.multi_reduction <add>, %10, %cst_8 [1] : vector<8x256xf32> to vector<8xf32>
    %13 = vector.shape_cast %12 : vector<8xf32> to vector<8x1xf32>
    %14 = arith.addf %11, %13 : vector<8x1xf32>
    %c0_9 = arith.constant 0 : index
    %c0_10 = arith.constant 0 : index
    %15 = vector.load %arg7[%c0_9, %c0_10] : memref<8x1xf32, #tpu.memory_space<vmem>>, vector<8x1xf32>
    tpu.vector_store %arg7[%c0_9, %c0_10], %14 {strides = array<i32>} : memref<8x1xf32, #tpu.memory_space<vmem>>, vector<8x1xf32>,
    %c0_11 = arith.constant 0 : index
    %c0_12 = arith.constant 0 : index
    %16 = vector.load %arg6[%c0_11, %c0_12] : memref<8x32xf32, #tpu.memory_space<vmem>>, vector<8x32xf32>
    %cst_13 = arith.constant dense<0.000000e+00> : vector<8x32xf32>
    %17 = tpu.matmul %10, %6, %cst_13 {dimension_numbers = #tpu.dot_dimension_numbers<[1], [1], [0], [0], [0, 0, 1, 0], [], []>} : vector<8x256xf32>, vector<32x256xf32>, vector<8x32xf32> -> vector<8x32xf32>
    %18 = arith.addf %16, %17 : vector<8x32xf32>
    %c0_14 = arith.constant 0 : index
    %c0_15 = arith.constant 0 : index
    %19 = vector.load %arg6[%c0_14, %c0_15] : memref<8x32xf32, #tpu.memory_space<vmem>>, vector<8x32xf32>
    tpu.vector_store %arg6[%c0_14, %c0_15], %18 {strides = array<i32>} : memref<8x32xf32, #tpu.memory_space<vmem>>, vector<8x32xf32>,
    %c0_i32_16 = arith.constant 0 : i32
    %20 = arith.cmpi eq, %arg2, %c0_i32_16 : i32
    %21 = arith.extui %20 : i1 to i32
    %c0_i32_17 = arith.constant 0 : i32
    %22 = arith.cmpi ne, %21, %c0_i32_17 : i32
    scf.if %22 {
      %c0_18 = arith.constant 0 : index
      %c0_19 = arith.constant 0 : index
      %23 = vector.load %arg7[%c0_18, %c0_19] : memref<8x1xf32, #tpu.memory_space<vmem>>, vector<8x1xf32>
      %cst_20 = arith.constant 9.99999993E-9 : f32
      %24 = vector.broadcast %cst_20 : f32 to vector<8x1xf32>
      %25 = arith.addf %23, %24 : vector<8x1xf32>
      %26 = tpu.reciprocal %25 : vector<8x1xf32> -> vector<8x1xf32>
      %c0_21 = arith.constant 0 : index
      %c0_22 = arith.constant 0 : index
      %27 = vector.load %arg6[%c0_21, %c0_22] : memref<8x32xf32, #tpu.memory_space<vmem>>, vector<8x32xf32>
      %28 = vector.broadcast %26 : vector<8x1xf32> to vector<8x32xf32>
      %29 = arith.mulf %27, %28 : vector<8x32xf32>
      %c0_23 = arith.constant 0 : index
      %c0_24 = arith.constant 0 : index
      %c0_25 = arith.constant 0 : index
      %30 = vector.load %arg5[%c0_23, %c0_24, %c0_25] : memref<1x8x32xf32, #tpu.memory_space<vmem>>, vector<1x8x32xf32>
      %31 = vector.shape_cast %30 : vector<1x8x32xf32> to vector<8x32xf32>
      %32 = vector.shape_cast %29 : vector<8x32xf32> to vector<1x8x32xf32>
      tpu.vector_store %arg5[%c0_23, %c0_24, %c0_25], %32 {strides = array<i32>} : memref<1x8x32xf32, #tpu.memory_space<vmem>>, vector<1x8x32xf32>,
    } else {
    }
    return
  }
  func.func @transform_0(%arg0: i32, %arg1: i32, %arg2: i32) -> (i32, i32, i32) {
    %c0_i32 = arith.constant 0 : i32
    return %arg1, %arg0, %arg2 : i32, i32, i32
  }
  func.func @transform_1(%arg0: i32, %arg1: i32, %arg2: i32) -> (i32, i32, i32) {
    %c0_i32 = arith.constant 0 : i32
    %c0_i32_0 = arith.constant 0 : i32
    return %arg1, %c0_i32, %arg2 : i32, i32, i32
  }
  func.func @transform_2(%arg0: i32, %arg1: i32, %arg2: i32) -> (i32, i32, i32) {
    %c0_i32 = arith.constant 0 : i32
    %c0_i32_0 = arith.constant 0 : i32
    return %arg1, %c0_i32, %arg0 : i32, i32, i32
  }
}

</mosaic_0001>

<bundles_post_ra>
// kernel: tpu_custom_call.1
= control target key start
LH: loop header
LB: loop body
LE: loop exit
PB: predicated region body
PF: predicated region fallthrough
CT: control target
= control target key end

     0   :  { %7 = vsyncpa [#allocation5], 0  ;;  %s928_s0 = inlined_call_operand.hbm [shape: f32[2,32,256], index: 0, kind: input, shape index: {}]   ;;  %s929_s1 = inlined_call_operand.hbm [shape: f32[2,8,256], index: 1, kind: input, shape index: {}]   ;;  %s930_s2 = inlined_call_operand.hbm [shape: f32[2,8,32], index: 2, kind: output, shape index: {}]  }
   0x1   :  { %9 = vsyncpa [#allocation5 + $0x1], 0 }
   0x2   :  { %10 = vsyncpa [#allocation8], 0 }
   0x3   :  { %12 = vsyncpa [#allocation8 + $0x1], 0 }
   0x4   :  { %13 = vsyncpa [#allocation6], 0 }
   0x5   :  { %15 = vsyncpa [#allocation6 + $0x1], 0  ;;  %s748_s9 = smov 0   ;;  %s750_s10 = smov 0  }
   0x6   :  { %s752_s11 = smov 0   ;;  %s754_s12 = smov 0  }
   0x7   :  { %s756_s13 = smov 0   ;;  %s758_s14 = smov 0  }
   0x8 LB: > { %s484_s15 = sadd.s32 4294967295, %s723_s14   ;;  %s485_s16 = sadd.s32 4294967294, %s723_s14   ;;  %s723_s14 = sphi %s758_s14, %s21_s14   ;;  %s719_s13 = sphi %s756_s13, %s942_s13   ;;  %s715_s12 = sphi %s754_s12, %s941_s12   ;;  %s711_s11 = sphi %s752_s11, %s940_s11   ;;  %s707_s10 = sphi %s750_s10, %s939_s10   ;;  %s703_s9 = sphi %s748_s9, %s938_s9  }
   0x9   : > { %s36_s17 = sadd.s32 1, %s719_s13  ;;  %s51_s18 = sadd.s32 1, %s711_s11 }
   0xa   : > { %p38_p0 = scmp.ge.s32.totalorder %s36_s17, 2  ;;  %p58_p1 = scmp.ne.s32.totalorder %s711_s11, %s707_s10 }
   0xb   : > { %p59_p2 = scmp.eq.s32.totalorder %s723_s14, 0  ;;  %p64_p3 = scmp.ne.s32.totalorder %s707_s10, %s703_s9 }
   0xc   : > { %s944_s17 = smov (%p38_p0, %s36_s17), 0  ;;  %p65_p5 = scmp.eq.s32.totalorder %s484_s15, 0 }
   0xd   : > { %p789_p4 = por %p59_p2, %p58_p1  ;;  %s44_s20 = ssub.s32 %s719_s13, %s944_s17 }
   0xe   : > { %p118_p6 = scmp.eq.s32.totalorder %s484_s15, 1  ;;  %p49_p7 = scmp.eq.s32.totalorder %s44_s20, 0 }
   0xf   : > { %p795_p8 = por %p65_p5, %p64_p3  ;;  %p124_p10 = scmp.eq.s32.totalorder %s485_s16, 1 }
  0x10   : > { %p799_p9 = por %p118_p6, %p58_p1  ;;  %p525_p13 = scmp.lt.s32.totalorder %s723_s14, 2 }
  0x11   : > { %s804_s23 = scalar_select %p49_p7, %s711_s11, %s51_s18  }
  0x12   : > { %p806_p11 = por %p124_p10, %p64_p3  ;;  %s813_s25 = sand.u32 1, %s711_s11  }
  0x13   : > { %s488_s26 = sshll.u32 %s813_s25, 6  ;;  %s506_s27 = sshll.u32 %s719_s13, 10 }
  0x14   : > { %s159_s30 = scalar_lea.hbm %s928_s0, %s506_s27  ;;  %s148_s3 = scalar_lea.vmem [#allocation4], %s488_s26 }
  0x15   : > { %s160_s4 = sshll.u32 %s148_s3, 4  ;;  %p822_p0 = pnand %p525_p13, %p789_p4  ;;  %s161_s4 = int_to_ptr.vmem [resolvable:$true] %s160_s4 }
  0x16   : > { %p494_p1 = scmp.ge.s32.totalorder %s723_s14, 1  ;;  %s145_s6 = scalar_lea.sflag [#allocation5], %s813_s25 }
  0x17   : > { %p585_p2 = pneg %p822_p0  ;;  %s596_s7 = scalar_lea.vmem %s161_s4, 1024 }
  0x18   : > { %p597_p3 = scmp.ne.s32.totalorder %s161_s4, %s596_s7  ;;  %s725_s8 = smov [#allocation4]  }
  0x19   : > { %s601_s15 = sshll.u32 %s725_s8, 4  ;;  %s602_s15 = int_to_ptr.vmem [resolvable:$false] %s601_s15 }
  0x1a   : > { %p599_p5 = pnand %p597_p3, %p585_p2  ;;  %s603_s16 = scalar_lea.vmem %s602_s15, 2048 }
  0x1b   : > { %p604_p4 = scmp.lt.s32.totalorder %s161_s4, %s602_s15  ;;  %p605_p7 = scmp.lt.s32.totalorder %s603_s16, %s596_s7 }
  0x1c   : > { %p600_p6 = pneg %p599_p5 }
  0x1d   : > { %p606_p10 = por %p605_p7, %p604_p4 }
  0x1f   : > { %p607_p13 = pnand %p606_p10, %p600_p6 }
  0x21   : > { %610 = shalt.err (!%p607_p13)
}
  0x22   : > { %s726_s18 = smov 256   ;;  %s727_s19 = smov 16  }
  0x23   : > { %517 = dma.hbm_to_vmem [thread:$0]  (!%p822_p0), %s159_s30, 1024, %s161_s4, %s145_s6, %s726_s18, %s726_s18, %s727_s19  }
  0x24   : > { %p189_p3 = scmp.lt.s32.totalorder %s723_s14, 3  ;;  %s491_s20 = sshll.u32 %s813_s25, 4 }
  0x25   : > { %s507_s26 = sshll.u32 %s719_s13, 8  ;;  %s174_s7 = scalar_lea.vmem [#allocation7], %s491_s20 }
  0x26   : > { %p840_p5 = pnand %p494_p1, %p189_p3  ;;  %s182_s3 = scalar_lea.hbm %s929_s1, %s507_s26 }
  0x27   : > { %s184_s8 = sshll.u32 %s174_s7, 4  ;;  %s171_s15 = scalar_lea.sflag [#allocation8], %s813_s25  ;;  %s185_s8 = int_to_ptr.vmem [resolvable:$true] %s184_s8 }
  0x28   : > { %s624_s16 = scalar_lea.vmem %s185_s8, 256  ;;  %s728_s30 = smov [#allocation7]  }
  0x29   : > { %p625_p6 = scmp.ne.s32.totalorder %s185_s8, %s624_s16  ;;  %s629_s4 = sshll.u32 %s728_s30, 4  ;;  %s630_s4 = int_to_ptr.vmem [resolvable:$false] %s629_s4 }
  0x2a   : > { %s631_s6 = scalar_lea.vmem %s630_s4, 512  ;;  %p632_p1 = scmp.lt.s32.totalorder %s185_s8, %s630_s4 }
  0x2b   : > { %p627_p4 = pnand %p625_p6, %p585_p2  ;;  %p633_p10 = scmp.lt.s32.totalorder %s631_s6, %s624_s16 }
  0x2d   : > { %p628_p7 = pneg %p627_p4  ;;  %p634_p13 = por %p633_p10, %p632_p1 }
  0x2f   : > { %p635_p3 = pnand %p634_p13, %p628_p7 }
  0x31   : > { %638 = shalt.err (!%p635_p3)
}
  0x32   : > { %520 = dma.hbm_to_vmem [thread:$0]  (!%p822_p0), %s182_s3, 256, %s185_s8, %s171_s15  }
  0x33   : > { %193 = sbr.rel (%p840_p5) target bundleno = 368 (0x170), region = 28  ;;  %s856_s25 = sand.u32 (!%p840_p5), 1, %s707_s10  }
  0x34   : > { %s495_s18 = sshll.u32 (!%p840_p5), %s856_s25, 6  ;;  %s196_s19 = scalar_lea.sflag (!%p840_p5), [#allocation5], %s856_s25 }
  0x35   : > { %s860_s20 = scalar_lea.vmem (!%p840_p5), [#allocation4], %s495_s18 }
  0x38   : > { %690 = dma.done.wait (%p795_p8), %s196_s19, 1024  }
  0x39   : > { %692 = vsyncadd (%p795_p8), %s196_s19, 4294966272  ;;  %s496_s5 = sshll.u32 %s856_s25, 4  ;;  %s205_s26 = scalar_lea.sflag [#allocation8], %s856_s25 }
  0x3a   : > { %s208_s27 = scalar_lea.vmem [#allocation7], %s496_s5 }
  0x3b   : > { %694 = dma.done.wait (%p795_p8), %s205_s26, 256  }
  0x3c   : > { %696 = vsyncadd (%p795_p8), %s205_s26, 4294967040  ;;  %vm241_vm0 = vcmask 261120   ;;  %vm243_vm1 = vcmask 7168   ;;  %v729_v0 = vmov 0.0   ;;  %v245_v1 = vld [vmem:[%s208_s27] sm:$0xff]  ;;  %v246_v2 = vld [vmem:[%s208_s27 + $0x8] sm:$0xff] }
  0x3d   : > { %242 = vst.msk [vmem:[#allocation2] sm:$0xff] %vm241_vm0, %v729_v0  ;;  %v254_v3 = vld [vmem:[%s860_s20 + $0x38] sm:$0xff]  ;;  %vm255_vm2 = vcmp.gt.f32.partialorder %v245_v1, 0.0  ;;  %vm256_vm3 = vcmp.gt.f32.partialorder %v246_v2, 0.0  ;;  %v253_v4 = vld [vmem:[%s860_s20 + $0x30] sm:$0xff]  ;;  %v252_v5 = vld [vmem:[%s860_s20 + $0x28] sm:$0xff] }
  0x3e   : > { %244 = vst.msk [vmem:[#allocation3] sm:$0xff] %vm243_vm1, %v729_v0  ;;  %293 = vmatprep.subr.mxu0 %v254_v3  ;;  %v498_v6 = vsel %vm255_vm2, 1.0, %v729_v0  ;;  %v499_v7 = vsel %vm256_vm3, 1.0, %v729_v0  ;;  %v730_v8 = vmov 1.0   ;;  %v251_v10 = vld [vmem:[%s860_s20 + $0x20] sm:$0xff]  ;;  %v250_v11 = vld [vmem:[%s860_s20 + $0x18] sm:$0xff] }
  0x3f   : > { %294 = vmatpush1.xpose.msra.mxu0 %v253_v4  ;;  %500 = vmatprep.mubr.msk.f32.mxu0 %vm256_vm3, %v730_v8  ;;  %v262_v9 = vadd.f32 %v499_v7, %v498_v6  ;;  %v249_v12 = vld [vmem:[%s860_s20 + $0x10] sm:$0xff]  ;;  %v248_v13 = vld [vmem:[%s860_s20 + $0x8] sm:$0xff]  ;;  %v247_v14 = vld [vmem:[%s860_s20] sm:$0xff]  ;;  %v731_v15 = vmov 0   ;;  %s497_s21 = sshll.u32 %s856_s25, 3  ;;  %s503_s28 = sshll.u32 %s715_s12, 7 }
  0x40   : > { %295 = vmatprep.subr.mxu0 %v252_v5  ;;  %580 = vset.pattern.permute.xlu0 %v731_v15  ;;  %s233_s29 = scalar_lea.vmem [#allocation9], %s497_s21  ;;  %s369_s15 = scalar_lea.hbm %s930_s2, %s503_s28 }
  0x41   : > { %263 = vadd.xlane.f32.xlu0 %v262_v9  ;;  %s371_s3 = sshll.u32 %s233_s29, 4  ;;  %s357_s16 = scalar_lea.sflag [#allocation6], %s856_s25  ;;  %s372_s3 = int_to_ptr.vmem [resolvable:$true] %s371_s3 }
  0x42   : > { %s639_s30 = scalar_lea.vmem %s372_s3, 128  ;;  %s732_s4 = smov [#allocation9]  }
  0x43   : > { %296 = vmatpush1.xpose.msra.mxu0 %v251_v10  ;;  %p640_p8 = scmp.ne.s32.totalorder %s372_s3, %s639_s30  ;;  %s643_s6 = sshll.u32 %s732_s4, 4  ;;  %s644_s6 = int_to_ptr.vmem [resolvable:$false] %s643_s6 }
  0x44   : > { %297 = vmatprep.subr.mxu0 %v250_v11  ;;  %v268_v22 = vld [vmem:[#allocation2] sm:$0xff]  ;;  %s645_s12 = scalar_lea.vmem %s644_s6, 256  ;;  %p646_p5 = scmp.lt.s32.totalorder %s372_s3, %s644_s6 }
  0x45   : > { %v261_v16 = vld [vmem:[#allocation3] sm:$0xff]  ;;  %p641_p0 = pnand %p640_p8, %p799_p9  ;;  %p647_p6 = scmp.lt.s32.totalorder %s645_s12, %s639_s30 }
  0x47   : > { %298 = vmatpush1.xpose.msra.mxu0 %v249_v12  ;;  %p642_p2 = pneg %p641_p0  ;;  %p648_p4 = por %p647_p6, %p646_p5 }
  0x48   : > { %299 = vmatprep.subr.mxu0 %v248_v13 }
  0x49   : > { %p649_p7 = pnand %p648_p4, %p642_p2 }
  0x4b   : > { %300 = vmatpush1.xpose.msra.mxu0 %v247_v14 }
  0x4e   : > { %501 = vmatmul.mubr.msk.f32.vlgmr.msra.gmra.mxu0 %vm255_vm2, %v730_v8 }
  0xca   : > { %v264_v17 = vpop.xlane.xlu0 %263 }
  0xcb   : > { %v265_v18 = vadd.f32 %v264_v17, %v261_v16 }
  0xcd   : > { %267 = vst.msk [vmem:[#allocation3] sm:$0xff] %vm243_vm1, %v265_v18 }
  0xd4   : > { %v345_v19 = vld [vmem:[#allocation3] sm:$0xff] }
  0xd5   : > { %v346_v20 = vadd.f32 1e-08, %v345_v19 }
  0xd7   : > { %581 = vrcp.f32 %v346_v20 }
  0xe4   : > { %v582_v21 = vpop.eup %581 }
  0xe5   : > { %351 = vperm.xlu0 %580, %v582_v21  }
 0x10e   : > { %v335_v23 = vpop.f32.mrf.mxu0 }
 0x10f   : > { %v339_v24 = vadd.f32 %v335_v23, %v268_v22 }
 0x110   : > { %v337_v25 = vpop.f32.mrf.mxu0 }
 0x111   : > { %341 = vst.msk [vmem:[#allocation2] sm:$0xff] %vm241_vm0, %v339_v24 }
 0x118   : > { %v348_v26 = vld [vmem:[#allocation2] sm:$0xff] }
 0x160   : > { %v352_v27 = vpop.permute.xlu0 %351 }
 0x161   : > { %v354_v28 = vmul.f32 %v352_v27, %v348_v26 }
 0x163   : > { %355 = vst.msk [vmem:[%s233_s29] sm:$0xff] %vm241_vm0, %v354_v28 }
 0x164   : > { %652 = shalt.err (!%p649_p7)
}
 0x165   : > { %s653_s18 = scalar_lea.hbm %s369_s15, 128  ;;  %s657_s20 = scalar_lea.hbm %s930_s2, 256 }
 0x166   : > { %p654_p1 = scmp.ne.s32.totalorder %s369_s15, %s653_s18  ;;  %p658_p3 = scmp.lt.s32.totalorder %s369_s15, %s930_s2 }
 0x167   : > { %p659_p8 = scmp.lt.s32.totalorder %s657_s20, %s653_s18 }
 0x168   : > { %p655_p10 = pnand %p654_p1, %p799_p9 }
 0x169   : > { %p660_p0 = por %p659_p8, %p658_p3 }
 0x16a   : > { %p656_p13 = pneg %p655_p10 }
 0x16c   : > { %p661_p12 = pnand %p660_p0, %p656_p13 }
 0x16e   : > { %664 = shalt.err (!%p661_p12)
}
 0x16f   : > { %512 = dma.vmem_to_hbm [thread:$0]  (%p799_p9), %s372_s3, 128, %s369_s15, %s357_s16  }
 0x170 PF: > { %s383_s27 = sand.u32 1, %s703_s9   ;;  %p937_p2 = scmp.ge.s32.totalorder %s723_s14, 2 }
 0x171   : > { %s384_s21 = scalar_lea.sflag [#allocation6], %s383_s27 }
 0x172   : > { %p522_p5 = pnand %p937_p2, %p806_p11 }
 0x174   : > { %p523_p6 = pneg %p522_p5 }
 0x176   : > { %698 = dma.done.wait (%p523_p6), %s384_s21, 128  }
 0x177   : > { %700 = vsyncadd (%p523_p6), %s384_s21, 4294967168  ;;  %s21_s14 = sadd.s32 1, %s723_s14   ;;  %s938_s9 = smov %s707_s10 }
 0x178   : > { %p18_p4 = scmp.ge.s32.totalorder %s21_s14, 4   ;;  %s939_s10 = smov %s711_s11 }
 0x179   : > { %s940_s11 = smov %s804_s23  ;;  %s941_s12 = smov %s719_s13 }
 0x17a   : > { %s942_s13 = smov %s944_s17  ;;  %20 = sbr.rel (!%p18_p4) target bundleno = 8 (0x8), region = 94 }
 0x17f   :  { %389 = vsyncpa [#allocation5], 1 }
 0x180   :  { %391 = vsyncpa [#allocation5 + $0x1], 1 }
 0x181   :  { %392 = vsyncpa [#allocation8], 1 }
 0x182   :  { %394 = vsyncpa [#allocation8 + $0x1], 1 }
 0x183   :  { %395 = vsyncpa [#allocation6], 1 }
 0x184   :  { %397 = vsyncpa [#allocation6 + $0x1], 1 }

</bundles_post_ra>
